<compile_context>
chip_gen: v7x
topology: tpu7x:2x2x1
jax: 0.10.0
libtpu: 0.0.40
codegen_flags: <defaults>
</compile_context>

<pallas_src>
import jax
import jax.numpy as jnp
from jax.experimental import pallas as pl
from jax.experimental.pallas import tpu as pltpu


def _round_up(x, m):
    return (x + m - 1) // m * m


# ---------------------------------------------------------------------------
# Phase 1: squeeze (global average pool, accumulated as a sum over S tiles)
# ---------------------------------------------------------------------------
def _squeeze_kernel(x_ref, sum_ref):
    # x_ref:   (R_TILE, S_TILE) tile of the (N_pad, S_pad) input
    # sum_ref: (R_TILE, 1) f32 accumulator, resident across the S grid axis
    @pl.when(pl.program_id(1) == 0)
    def _():
        sum_ref[...] = jnp.zeros_like(sum_ref)

    sum_ref[...] += jnp.sum(
        x_ref[...].astype(jnp.float32), axis=-1, keepdims=True
    )


# ---------------------------------------------------------------------------
# Phase 2: scale (broadcast the per-channel gate over the spatial lanes)
# ---------------------------------------------------------------------------
def _scale_kernel(g_ref, x_ref, o_ref):
    # g_ref: (R_TILE, 1) gates; x_ref / o_ref: (R_TILE, S_TILE)
    # Multiply in the input dtype (native bf16 on v6e/v7x; exact for f32).
    o_ref[...] = x_ref[...] * g_ref[...].astype(x_ref.dtype)


def channel_se_layer_3d(x, w1, b1, w2, b2):
    """x: (B, C, D, H, W); w1: (C, Cr); b1: (Cr,); w2: (Cr, C); b2: (C,)."""
    B, C, D, H, W = x.shape
    S = D * H * W
    N = B * C

    # --- tile selection (kept small enough for v5e/v7x VMEM budgets) ---
    N_pad = _round_up(N, 8)
    R_TILE = next(c for c in (64, 32, 16, 8) if c <= N_pad and N_pad % c == 0)

    S_pad128 = _round_up(S, 128)
    if S_pad128 <= 8192:            # small volumes: one lane-dense slab per row-tile
        S_TILE = S_pad128
    else:                            # large volumes: stream 2048-lane tiles
        S_TILE = 2048
    S_pad = _round_up(S_pad128, S_TILE)

    x2 = x.reshape(N, S)
    if (N_pad, S_pad) != (N, S):
        x2 = jnp.pad(x2, ((0, N_pad - N), (0, S_pad - S)))

    grid = (N_pad // R_TILE, S_pad // S_TILE)
    cparams_reduce = pltpu.CompilerParams(
        dimension_semantics=("parallel", "arbitrary"),
        vmem_limit_bytes=32 * 1024 * 1024,
    )
    cparams_stream = pltpu.CompilerParams(
        dimension_semantics=("parallel", "parallel"),
        vmem_limit_bytes=32 * 1024 * 1024,
    )

    # --- phase 1: per-(b,c) spatial sums ---
    sums = pl.pallas_call(
        _squeeze_kernel,
        out_shape=jax.ShapeDtypeStruct((N_pad, 1), jnp.float32),
        grid_spec=pltpu.PrefetchScalarGridSpec(
            num_scalar_prefetch=0,
            grid=grid,
            in_specs=[pl.BlockSpec((R_TILE, S_TILE), lambda i, j: (i, j))],
            out_specs=pl.BlockSpec((R_TILE, 1), lambda i, j: (i, 0)),
        ),
        compiler_params=cparams_reduce,
    )(x2)

    # --- gate: fc1 -> relu -> fc2 -> sigmoid, batched over B (tiny, plain XLA) ---
    z = (sums[:N, 0] / jnp.float32(S)).reshape(B, C)               # (B, C) means
    h = jax.nn.relu(z @ w1.astype(jnp.float32) + b1.astype(jnp.float32))
    g = jax.nn.sigmoid(h @ w2.astype(jnp.float32) + b2.astype(jnp.float32))
    gates = g.reshape(N, 1)
    if N_pad != N:
        gates = jnp.pad(gates, ((0, N_pad - N), (0, 0)))

    # --- phase 2: scale x by the gates ---
    out2 = pl.pallas_call(
        _scale_kernel,
        out_shape=jax.ShapeDtypeStruct((N_pad, S_pad), x.dtype),
        grid_spec=pltpu.PrefetchScalarGridSpec(
            num_scalar_prefetch=0,
            grid=grid,
            in_specs=[
                pl.BlockSpec((R_TILE, 1), lambda i, j: (i, 0)),
                pl.BlockSpec((R_TILE, S_TILE), lambda i, j: (i, j)),
            ],
            out_specs=pl.BlockSpec((R_TILE, S_TILE), lambda i, j: (i, j)),
        ),
        compiler_params=cparams_stream,
    )(gates, x2)

    return out2[:N, :S].reshape(B, C, D, H, W)


def _reference(x, w1, b1, w2, b2):
    B, C = x.shape[0], x.shape[1]
    z = jnp.mean(x.reshape(B, C, -1).astype(jnp.float32), axis=-1)   # (B, C)
    h = jax.nn.relu(z @ w1 + b1)
    g = jax.nn.sigmoid(h @ w2 + b2)
    return (x.astype(jnp.float32) * g[:, :, None, None, None]).astype(x.dtype)


if __name__ == "__main__":
    # Module config: num_channels=4, reduction_ratio=2 -> reduced channels = 2.
    B, C, D, H, W = 2, 4, 16, 16, 16
    Cr = C // 2

    key = jax.random.PRNGKey(0)
    kx, k1, k2, k3, k4 = jax.random.split(key, 5)

    x = jax.random.normal(kx, (B, C, D, H, W), dtype=jnp.float32)
    # Parameters stored as (in, out) so the gate does z @ w (== PyTorch x @ W.T).
    w1 = jax.random.normal(k1, (C, Cr), dtype=jnp.float32) * 0.5
    b1 = jax.random.normal(k2, (Cr,), dtype=jnp.float32) * 0.1
    w2 = jax.random.normal(k3, (Cr, C), dtype=jnp.float32) * 0.5
    b2 = jax.random.normal(k4, (C,), dtype=jnp.float32) * 0.1

    fn = jax.jit(channel_se_layer_3d)
    out = fn(x, w1, b1, w2, b2)
    out = jax.block_until_ready(out)

    ref = _reference(x, w1, b1, w2, b2)
    assert out.shape == (B, C, D, H, W)
    assert jnp.allclose(out, ref, atol=1e-5, rtol=1e-5)

    print("KERNEL_OK")
</pallas_src>

<mosaic_0001>
module attributes {stable_mosaic.version = 11 : i64} {
  func.func @_squeeze_kernel(%arg0: i32, %arg1: i32, %arg2: memref<8x4096xf32, #tpu.memory_space<vmem>>, %arg3: memref<8x1xf32, #tpu.memory_space<vmem>>) attributes {dimension_semantics = [#tpu.dimension_semantics<parallel>, #tpu.dimension_semantics<arbitrary>], iteration_bounds = array<i64: 1, 1>, scalar_prefetch = 0 : i64, scratch_operands = 0 : i64, tpu.core_type = #tpu.core_type<tc>, window_params = [{transform_indices = @transform_0, window_bounds = array<i64: 8, 4096>}, {transform_indices = @transform_1, window_bounds = array<i64: 8, 1>}]} {
    %c0_i32 = arith.constant 0 : i32
    %0 = arith.cmpi eq, %arg1, %c0_i32 : i32
    %1 = arith.extui %0 : i1 to i32
    %c0_i32_0 = arith.constant 0 : i32
    %2 = arith.cmpi ne, %1, %c0_i32_0 : i32
    scf.if %2 {
      %cst_6 = arith.constant 0.000000e+00 : f32
      %9 = vector.broadcast %cst_6 : f32 to vector<8x1xf32>
      %c0_7 = arith.constant 0 : index
      %c0_8 = arith.constant 0 : index
      %10 = vector.load %arg3[%c0_7, %c0_8] : memref<8x1xf32, #tpu.memory_space<vmem>>, vector<8x1xf32>
      tpu.vector_store %arg3[%c0_7, %c0_8], %9 {strides = array<i32>} : memref<8x1xf32, #tpu.memory_space<vmem>>, vector<8x1xf32>,
    } else {
    }
    %c0 = arith.constant 0 : index
    %c0_1 = arith.constant 0 : index
    %3 = vector.load %arg3[%c0, %c0_1] : memref<8x1xf32, #tpu.memory_space<vmem>>, vector<8x1xf32>
    %c0_2 = arith.constant 0 : index
    %c0_3 = arith.constant 0 : index
    %4 = vector.load %arg2[%c0_2, %c0_3] : memref<8x4096xf32, #tpu.memory_space<vmem>>, vector<8x4096xf32>
    %cst = arith.constant dense<0.000000e+00> : vector<8xf32>
    %5 = vector.multi_reduction <add>, %4, %cst [1] : vector<8x4096xf32> to vector<8xf32>
    %6 = vector.shape_cast %5 : vector<8xf32> to vector<8x1xf32>
    %7 = arith.addf %3, %6 : vector<8x1xf32>
    %c0_4 = arith.constant 0 : index
    %c0_5 = arith.constant 0 : index
    %8 = vector.load %arg3[%c0_4, %c0_5] : memref<8x1xf32, #tpu.memory_space<vmem>>, vector<8x1xf32>
    tpu.vector_store %arg3[%c0_4, %c0_5], %7 {strides = array<i32>} : memref<8x1xf32, #tpu.memory_space<vmem>>, vector<8x1xf32>,
    return
  }
  func.func @transform_0(%arg0: i32, %arg1: i32) -> (i32, i32) {
    %c0_i32 = arith.constant 0 : i32
    return %arg0, %arg1 : i32, i32
  }
  func.func @transform_1(%arg0: i32, %arg1: i32) -> (i32, i32) {
    %c0_i32 = arith.constant 0 : i32
    %c0_i32_0 = arith.constant 0 : i32
    return %arg0, %c0_i32 : i32, i32
  }
}

module attributes {stable_mosaic.version = 11 : i64} {
  func.func @_scale_kernel(%arg0: i32, %arg1: i32, %arg2: memref<8x1xf32, #tpu.memory_space<vmem>>, %arg3: memref<8x4096xf32, #tpu.memory_space<vmem>>, %arg4: memref<8x4096xf32, #tpu.memory_space<vmem>>) attributes {dimension_semantics = [#tpu.dimension_semantics<parallel>, #tpu.dimension_semantics<parallel>], iteration_bounds = array<i64: 1, 1>, scalar_prefetch = 0 : i64, scratch_operands = 0 : i64, tpu.core_type = #tpu.core_type<tc>, window_params = [{transform_indices = @transform_0, window_bounds = array<i64: 8, 1>}, {transform_indices = @transform_1, window_bounds = array<i64: 8, 4096>}, {transform_indices = @transform_2, window_bounds = array<i64: 8, 4096>}]} {
    %c0 = arith.constant 0 : index
    %c0_0 = arith.constant 0 : index
    %0 = vector.load %arg3[%c0, %c0_0] : memref<8x4096xf32, #tpu.memory_space<vmem>>, vector<8x4096xf32>
    %c0_1 = arith.constant 0 : index
    %c0_2 = arith.constant 0 : index
    %1 = vector.load %arg2[%c0_1, %c0_2] : memref<8x1xf32, #tpu.memory_space<vmem>>, vector<8x1xf32>
    %2 = vector.broadcast %1 : vector<8x1xf32> to vector<8x4096xf32>
    %3 = arith.mulf %0, %2 : vector<8x4096xf32>
    %c0_3 = arith.constant 0 : index
    %c0_4 = arith.constant 0 : index
    %4 = vector.load %arg4[%c0_3, %c0_4] : memref<8x4096xf32, #tpu.memory_space<vmem>>, vector<8x4096xf32>
    tpu.vector_store %arg4[%c0_3, %c0_4], %3 {strides = array<i32>} : memref<8x4096xf32, #tpu.memory_space<vmem>>, vector<8x4096xf32>,
    return
  }
  func.func @transform_0(%arg0: i32, %arg1: i32) -> (i32, i32) {
    %c0_i32 = arith.constant 0 : i32
    %c0_i32_0 = arith.constant 0 : i32
    return %arg0, %c0_i32 : i32, i32
  }
  func.func @transform_1(%arg0: i32, %arg1: i32) -> (i32, i32) {
    %c0_i32 = arith.constant 0 : i32
    return %arg0, %arg1 : i32, i32
  }
  func.func @transform_2(%arg0: i32, %arg1: i32) -> (i32, i32) {
    %c0_i32 = arith.constant 0 : i32
    return %arg0, %arg1 : i32, i32
  }
}

</mosaic_0001>

<bundles_post_ra>
// kernel: channel_se_layer_3d.2
= control target key start
LH: loop header
LB: loop body
LE: loop exit
PB: predicated region body
PF: predicated region fallthrough
CT: control target
= control target key end

     0   :  { %vm12_vm0 = vcmask 7168   ;;  %v88_v3 = vmov 0.0   ;;  %s206_s0 = inlined_call_operand.vmem [shape: f32[8,4096], index: 0, kind: input, shape index: {}]   ;;  %s207_s1 = inlined_call_operand.vmem [shape: f32[8,1], index: 1, kind: output, shape index: {}]  }
   0x1   :  { %v15_v0 = vld [vmem:[%s206_s0] sm:$0xff]  ;;  %v16_v1 = vld [vmem:[%s206_s0 + $0x8] sm:$0xff]  ;;  %v17_v2 = vld [vmem:[%s206_s0 + $0x10] sm:$0xff]  ;;  %13 = vst.msk [vmem:[%s207_s1] sm:$0xff] %vm12_vm0, %v88_v3 }
   0x2   :  { %v47_v4 = vadd.f32 %v16_v1, %v15_v0  ;;  %v18_v5 = vld [vmem:[%s206_s0 + $0x18] sm:$0xff]  ;;  %v19_v7 = vld [vmem:[%s206_s0 + $0x20] sm:$0xff]  ;;  %v20_v9 = vld [vmem:[%s206_s0 + $0x28] sm:$0xff] }
   0x3   :  { %v21_v11 = vld [vmem:[%s206_s0 + $0x30] sm:$0xff]  ;;  %v22_v13 = vld [vmem:[%s206_s0 + $0x38] sm:$0xff]  ;;  %v23_v15 = vld [vmem:[%s206_s0 + $0x40] sm:$0xff] }
   0x4   :  { %v48_v6 = vadd.f32 %v47_v4, %v17_v2  ;;  %v24_v17 = vld [vmem:[%s206_s0 + $0x48] sm:$0xff]  ;;  %v25_v19 = vld [vmem:[%s206_s0 + $0x50] sm:$0xff]  ;;  %v26_v21 = vld [vmem:[%s206_s0 + $0x58] sm:$0xff] }
   0x5   :  { %v27_v23 = vld [vmem:[%s206_s0 + $0x60] sm:$0xff]  ;;  %v28_v25 = vld [vmem:[%s206_s0 + $0x68] sm:$0xff]  ;;  %v29_v27 = vld [vmem:[%s206_s0 + $0x70] sm:$0xff] }
   0x6   :  { %v49_v8 = vadd.f32 %v48_v6, %v18_v5  ;;  %v30_v29 = vld [vmem:[%s206_s0 + $0x78] sm:$0xff]  ;;  %v31_v31 = vld [vmem:[%s206_s0 + $0x80] sm:$0xff]  ;;  %v32_v33 = vld [vmem:[%s206_s0 + $0x88] sm:$0xff] }
   0x7   :  { %v33_v35 = vld [vmem:[%s206_s0 + $0x90] sm:$0xff]  ;;  %v34_v37 = vld [vmem:[%s206_s0 + $0x98] sm:$0xff]  ;;  %v35_v39 = vld [vmem:[%s206_s0 + $0xa0] sm:$0xff] }
   0x8   :  { %v50_v10 = vadd.f32 %v49_v8, %v19_v7  ;;  %v36_v41 = vld [vmem:[%s206_s0 + $0xa8] sm:$0xff]  ;;  %v37_v43 = vld [vmem:[%s206_s0 + $0xb0] sm:$0xff]  ;;  %v38_v45 = vld [vmem:[%s206_s0 + $0xb8] sm:$0xff] }
   0x9   :  { %v39_v47 = vld [vmem:[%s206_s0 + $0xc0] sm:$0xff]  ;;  %v40_v49 = vld [vmem:[%s206_s0 + $0xc8] sm:$0xff]  ;;  %v41_v51 = vld [vmem:[%s206_s0 + $0xd0] sm:$0xff] }
   0xa   :  { %v51_v12 = vadd.f32 %v50_v10, %v20_v9  ;;  %v42_v53 = vld [vmem:[%s206_s0 + $0xd8] sm:$0xff]  ;;  %v43_v55 = vld [vmem:[%s206_s0 + $0xe0] sm:$0xff]  ;;  %v44_v57 = vld [vmem:[%s206_s0 + $0xe8] sm:$0xff] }
   0xb   :  { %v45_v59 = vld [vmem:[%s206_s0 + $0xf0] sm:$0xff]  ;;  %v46_v61 = vld [vmem:[%s206_s0 + $0xf8] sm:$0xff]  ;;  %v14_v0 = vld [vmem:[%s207_s1] sm:$0xff] }
   0xc   :  { %v52_v14 = vadd.f32 %v51_v12, %v21_v11 }
   0xe   :  { %v53_v16 = vadd.f32 %v52_v14, %v22_v13 }
  0x10   :  { %v54_v18 = vadd.f32 %v53_v16, %v23_v15 }
  0x12   :  { %v55_v20 = vadd.f32 %v54_v18, %v24_v17 }
  0x14   :  { %v56_v22 = vadd.f32 %v55_v20, %v25_v19 }
  0x16   :  { %v57_v24 = vadd.f32 %v56_v22, %v26_v21 }
  0x18   :  { %v58_v26 = vadd.f32 %v57_v24, %v27_v23 }
  0x1a   :  { %v59_v28 = vadd.f32 %v58_v26, %v28_v25 }
  0x1c   :  { %v60_v30 = vadd.f32 %v59_v28, %v29_v27 }
  0x1e   :  { %v61_v32 = vadd.f32 %v60_v30, %v30_v29 }
  0x20   :  { %v62_v34 = vadd.f32 %v61_v32, %v31_v31 }
  0x22   :  { %v63_v36 = vadd.f32 %v62_v34, %v32_v33 }
  0x24   :  { %v64_v38 = vadd.f32 %v63_v36, %v33_v35 }
  0x26   :  { %v65_v40 = vadd.f32 %v64_v38, %v34_v37 }
  0x28   :  { %v66_v42 = vadd.f32 %v65_v40, %v35_v39 }
  0x2a   :  { %v67_v44 = vadd.f32 %v66_v42, %v36_v41 }
  0x2c   :  { %v68_v46 = vadd.f32 %v67_v44, %v37_v43 }
  0x2e   :  { %v69_v48 = vadd.f32 %v68_v46, %v38_v45 }
  0x30   :  { %v70_v50 = vadd.f32 %v69_v48, %v39_v47 }
  0x32   :  { %v71_v52 = vadd.f32 %v70_v50, %v40_v49 }
  0x34   :  { %v72_v54 = vadd.f32 %v71_v52, %v41_v51 }
  0x36   :  { %v73_v56 = vadd.f32 %v72_v54, %v42_v53 }
  0x38   :  { %v74_v58 = vadd.f32 %v73_v56, %v43_v55 }
  0x3a   :  { %v75_v60 = vadd.f32 %v74_v58, %v44_v57 }
  0x3c   :  { %v76_v62 = vadd.f32 %v75_v60, %v45_v59 }
  0x3e   :  { %v77_v63 = vadd.f32 %v76_v62, %v46_v61 }
  0x40   :  { %78 = vadd.xlane.f32.xlu0 %v77_v63 }
  0xcd   :  { %v79_v1 = vpop.xlane.xlu0 %78 }
  0xce   :  { %v80_v2 = vadd.f32 %v79_v1, %v14_v0 }
  0xd0   :  { %82 = vst.msk [vmem:[%s207_s1] sm:$0xff] %vm12_vm0, %v80_v2 }

// kernel: channel_se_layer_3d.3
= control target key start
LH: loop header
LB: loop body
LE: loop exit
PB: predicated region body
PF: predicated region fallthrough
CT: control target
= control target key end

     0   :  { %v119_v0 = vmov 0   ;;  %s364_s0 = inlined_call_operand.vmem [shape: f32[8,1], index: 0, kind: input, shape index: {}]   ;;  %s365_s1 = inlined_call_operand.vmem [shape: f32[8,4096], index: 1, kind: input, shape index: {}]   ;;  %s366_s2 = inlined_call_operand.vmem [shape: f32[8,4096], index: 2, kind: output, shape index: {}]  }
   0x1   :  { %118 = vset.pattern.permute.xlu0 %v119_v0  ;;  %v43_v1 = vld [vmem:[%s364_s0] sm:$0xff]  ;;  %v12_v3 = vld [vmem:[%s365_s1 + $0x8] sm:$0xff]  ;;  %v13_v4 = vld [vmem:[%s365_s1 + $0x10] sm:$0xff] }
   0x2   :  { %46 = vperm.xlu0 %118, %v43_v1   ;;  %v11_v2 = vld [vmem:[%s365_s1] sm:$0xff]  ;;  %v14_v5 = vld [vmem:[%s365_s1 + $0x18] sm:$0xff]  ;;  %v16_v7 = vld [vmem:[%s365_s1 + $0x28] sm:$0xff] }
   0x3   :  { %v15_v6 = vld [vmem:[%s365_s1 + $0x20] sm:$0xff]  ;;  %v17_v8 = vld [vmem:[%s365_s1 + $0x30] sm:$0xff]  ;;  %v18_v9 = vld [vmem:[%s365_s1 + $0x38] sm:$0xff] }
   0x4   :  { %v19_v10 = vld [vmem:[%s365_s1 + $0x40] sm:$0xff]  ;;  %v20_v11 = vld [vmem:[%s365_s1 + $0x48] sm:$0xff]  ;;  %v21_v12 = vld [vmem:[%s365_s1 + $0x50] sm:$0xff] }
   0x5   :  { %v22_v13 = vld [vmem:[%s365_s1 + $0x58] sm:$0xff]  ;;  %v23_v14 = vld [vmem:[%s365_s1 + $0x60] sm:$0xff]  ;;  %v24_v15 = vld [vmem:[%s365_s1 + $0x68] sm:$0xff] }
   0x6   :  { %v25_v16 = vld [vmem:[%s365_s1 + $0x70] sm:$0xff]  ;;  %v26_v17 = vld [vmem:[%s365_s1 + $0x78] sm:$0xff]  ;;  %v27_v18 = vld [vmem:[%s365_s1 + $0x80] sm:$0xff] }
   0x7   :  { %v28_v20 = vld [vmem:[%s365_s1 + $0x88] sm:$0xff]  ;;  %v29_v21 = vld [vmem:[%s365_s1 + $0x90] sm:$0xff]  ;;  %v30_v22 = vld [vmem:[%s365_s1 + $0x98] sm:$0xff] }
   0x8   :  { %v31_v27 = vld [vmem:[%s365_s1 + $0xa0] sm:$0xff]  ;;  %v32_v28 = vld [vmem:[%s365_s1 + $0xa8] sm:$0xff]  ;;  %v33_v29 = vld [vmem:[%s365_s1 + $0xb0] sm:$0xff] }
   0x9   :  { %v34_v34 = vld [vmem:[%s365_s1 + $0xb8] sm:$0xff]  ;;  %v35_v35 = vld [vmem:[%s365_s1 + $0xc0] sm:$0xff]  ;;  %v36_v36 = vld [vmem:[%s365_s1 + $0xc8] sm:$0xff] }
   0xa   :  { %v37_v41 = vld [vmem:[%s365_s1 + $0xd0] sm:$0xff]  ;;  %v38_v42 = vld [vmem:[%s365_s1 + $0xd8] sm:$0xff]  ;;  %v39_v43 = vld [vmem:[%s365_s1 + $0xe0] sm:$0xff] }
   0xb   :  { %v40_v48 = vld [vmem:[%s365_s1 + $0xe8] sm:$0xff]  ;;  %v41_v49 = vld [vmem:[%s365_s1 + $0xf0] sm:$0xff]  ;;  %v42_v50 = vld [vmem:[%s365_s1 + $0xf8] sm:$0xff] }
  0x81   :  { %v189_v19 = vpop.permute.xlu0 %46 }
  0x82   :  { %v49_v23 = vmul.f32 %v189_v19, %v11_v2  ;;  %v50_v24 = vmul.f32 %v189_v19, %v12_v3  ;;  %v51_v25 = vmul.f32 %v189_v19, %v13_v4  ;;  %v52_v26 = vmul.f32 %v189_v19, %v14_v5 }
  0x83   :  { %v53_v30 = vmul.f32 %v189_v19, %v15_v6  ;;  %v54_v31 = vmul.f32 %v189_v19, %v16_v7  ;;  %v55_v32 = vmul.f32 %v189_v19, %v17_v8  ;;  %v56_v33 = vmul.f32 %v189_v19, %v18_v9 }
  0x84   :  { %v57_v37 = vmul.f32 %v189_v19, %v19_v10  ;;  %v58_v38 = vmul.f32 %v189_v19, %v20_v11  ;;  %v59_v39 = vmul.f32 %v189_v19, %v21_v12  ;;  %v60_v40 = vmul.f32 %v189_v19, %v22_v13  ;;  %81 = vst [vmem:[%s366_s2] sm:$0xff] %v49_v23 }
  0x85   :  { %82 = vst [vmem:[%s366_s2 + $0x8] sm:$0xff] %v50_v24  ;;  %83 = vst [vmem:[%s366_s2 + $0x10] sm:$0xff] %v51_v25  ;;  %v61_v44 = vmul.f32 %v189_v19, %v23_v14  ;;  %v62_v45 = vmul.f32 %v189_v19, %v24_v15  ;;  %v63_v46 = vmul.f32 %v189_v19, %v25_v16 }
  0x86   :  { %84 = vst [vmem:[%s366_s2 + $0x18] sm:$0xff] %v52_v26  ;;  %v64_v47 = vmul.f32 %v189_v19, %v26_v17  ;;  %85 = vst [vmem:[%s366_s2 + $0x20] sm:$0xff] %v53_v30  ;;  %v65_v51 = vmul.f32 %v189_v19, %v27_v18  ;;  %v66_v52 = vmul.f32 %v189_v19, %v28_v20 }
  0x87   :  { %86 = vst [vmem:[%s366_s2 + $0x28] sm:$0xff] %v54_v31  ;;  %87 = vst [vmem:[%s366_s2 + $0x30] sm:$0xff] %v55_v32  ;;  %v67_v53 = vmul.f32 %v189_v19, %v29_v21  ;;  %v68_v54 = vmul.f32 %v189_v19, %v30_v22  ;;  %v69_v55 = vmul.f32 %v189_v19, %v31_v27 }
  0x88   :  { %88 = vst [vmem:[%s366_s2 + $0x38] sm:$0xff] %v56_v33  ;;  %89 = vst [vmem:[%s366_s2 + $0x40] sm:$0xff] %v57_v37  ;;  %v70_v56 = vmul.f32 %v189_v19, %v32_v28  ;;  %v71_v57 = vmul.f32 %v189_v19, %v33_v29  ;;  %v72_v58 = vmul.f32 %v189_v19, %v34_v34 }
  0x89   :  { %90 = vst [vmem:[%s366_s2 + $0x48] sm:$0xff] %v58_v38  ;;  %91 = vst [vmem:[%s366_s2 + $0x50] sm:$0xff] %v59_v39  ;;  %v73_v59 = vmul.f32 %v189_v19, %v35_v35  ;;  %v74_v60 = vmul.f32 %v189_v19, %v36_v36  ;;  %v75_v61 = vmul.f32 %v189_v19, %v37_v41 }
  0x8a   :  { %92 = vst [vmem:[%s366_s2 + $0x58] sm:$0xff] %v60_v40  ;;  %93 = vst [vmem:[%s366_s2 + $0x60] sm:$0xff] %v61_v44  ;;  %v76_v62 = vmul.f32 %v189_v19, %v38_v42  ;;  %v77_v63 = vmul.f32 %v189_v19, %v39_v43  ;;  %v78_v0 = vmul.f32 %v189_v19, %v40_v48 }
  0x8b   :  { %94 = vst [vmem:[%s366_s2 + $0x68] sm:$0xff] %v62_v45  ;;  %95 = vst [vmem:[%s366_s2 + $0x70] sm:$0xff] %v63_v46  ;;  %v79_v1 = vmul.f32 %v189_v19, %v41_v49  ;;  %v80_v2 = vmul.f32 %v189_v19, %v42_v50 }
  0x8c   :  { %96 = vst [vmem:[%s366_s2 + $0x78] sm:$0xff] %v64_v47  ;;  %97 = vst [vmem:[%s366_s2 + $0x80] sm:$0xff] %v65_v51 }
  0x8d   :  { %98 = vst [vmem:[%s366_s2 + $0x88] sm:$0xff] %v66_v52  ;;  %99 = vst [vmem:[%s366_s2 + $0x90] sm:$0xff] %v67_v53 }
  0x8e   :  { %100 = vst [vmem:[%s366_s2 + $0x98] sm:$0xff] %v68_v54  ;;  %101 = vst [vmem:[%s366_s2 + $0xa0] sm:$0xff] %v69_v55 }
  0x8f   :  { %102 = vst [vmem:[%s366_s2 + $0xa8] sm:$0xff] %v70_v56  ;;  %103 = vst [vmem:[%s366_s2 + $0xb0] sm:$0xff] %v71_v57 }
  0x90   :  { %104 = vst [vmem:[%s366_s2 + $0xb8] sm:$0xff] %v72_v58  ;;  %105 = vst [vmem:[%s366_s2 + $0xc0] sm:$0xff] %v73_v59 }
  0x91   :  { %106 = vst [vmem:[%s366_s2 + $0xc8] sm:$0xff] %v74_v60  ;;  %107 = vst [vmem:[%s366_s2 + $0xd0] sm:$0xff] %v75_v61 }
  0x92   :  { %108 = vst [vmem:[%s366_s2 + $0xd8] sm:$0xff] %v76_v62  ;;  %109 = vst [vmem:[%s366_s2 + $0xe0] sm:$0xff] %v77_v63 }
  0x93   :  { %110 = vst [vmem:[%s366_s2 + $0xe8] sm:$0xff] %v78_v0  ;;  %111 = vst [vmem:[%s366_s2 + $0xf0] sm:$0xff] %v79_v1 }
  0x94   :  { %112 = vst [vmem:[%s366_s2 + $0xf8] sm:$0xff] %v80_v2 }

</bundles_post_ra>
